<compile_context>
chip_gen: v7x
topology: tpu7x:2x2x1
jax: 0.10.0
libtpu: 0.0.40
codegen_flags: <defaults>
</compile_context>

<pallas_src>
import functools

import jax
import jax.numpy as jnp
from jax.experimental import pallas as pl
from jax.experimental.pallas import tpu as pltpu


# ---------------------------------------------------------------------------
# Kernels: operands live in HBM, everything is done with async DMAs.
# ---------------------------------------------------------------------------

def _factor_kernel(x_ref, rest_ref, fact_ref, sems, *, split):
    # z is None.
    # x_ref:    (B, N)          HBM
    # rest_ref: (B, N - split)  HBM   <- x[:, split:]
    # fact_ref: (B, split)      HBM   <- x[:, :split]   (the flattened z output)
    n = x_ref.shape[1]
    cp_rest = pltpu.make_async_copy(
        x_ref.at[:, pl.ds(split, n - split)], rest_ref, sems.at[0])
    cp_fact = pltpu.make_async_copy(
        x_ref.at[:, pl.ds(0, split)], fact_ref, sems.at[1])
    cp_rest.start()
    cp_fact.start()
    cp_rest.wait()
    cp_fact.wait()


def _factor_concat_kernel(z_ref, x_ref, rest_ref, znew_ref, sems, *, split, z_len):
    # z provided.  Fused split + concat as three HBM->HBM DMAs.
    # z_ref:    (B, z_len)
    # x_ref:    (B, N)
    # rest_ref: (B, N - split)          <- x[:, split:]
    # znew_ref: (B, z_len + split)      <- concat([z, x[:, :split]], axis=1)
    n = x_ref.shape[1]
    cp_rest = pltpu.make_async_copy(
        x_ref.at[:, pl.ds(split, n - split)], rest_ref, sems.at[0])
    cp_fact = pltpu.make_async_copy(
        x_ref.at[:, pl.ds(0, split)],
        znew_ref.at[:, pl.ds(z_len, split)], sems.at[1])
    cp_z = pltpu.make_async_copy(
        z_ref, znew_ref.at[:, pl.ds(0, z_len)], sems.at[2])
    # Start everything before waiting on anything -> copies overlap.
    cp_rest.start()
    cp_fact.start()
    cp_z.start()
    cp_rest.wait()
    cp_fact.wait()
    cp_z.wait()


# ---------------------------------------------------------------------------
# Wrapper
# ---------------------------------------------------------------------------

def factor_out_forward(x, log_det_jac, z=None):
    """Pallas implementation of FactorOut.forward.

    Returns (x[:, k:], log_det_jac, z_new) with
      k = C//2 + (C//2) % 2
      z_new = flatten(x[:, :k]) if z is None
              else concat([z, flatten(x[:, :k])], axis=1)
    """
    B, C, H, W = x.shape
    k = C // 2
    k += k % 2
    N = C * H * W
    split = k * H * W
    itemsize = jnp.dtype(x.dtype).itemsize

    dtype_mismatch = (z is not None) and (z.dtype != x.dtype)
    # Degenerate sizes (empty batch / one side of the split empty) or mismatched
    # dtypes: no kernel, plain XLA slice/concat.
    # TODO(synk): mismatched z dtype keeps the concat in XLA (torch.cat would
    # require matching dtypes anyway).
    if B == 0 or split == 0 or split == N or dtype_mismatch:
        fact_flat = x[:, :k].reshape(B, -1)
        z_new = fact_flat if z is None else jnp.concatenate([z, fact_flat], axis=1)
        return x[:, k:], log_det_jac, z_new

    x_flat = x.reshape(B, N)  # contiguous NCHW: channels-major per row.
    use_z = (z is not None) and (z.shape[1] > 0)

    if not use_z:
        kernel = functools.partial(_factor_kernel, split=split)
        bytes_accessed = 2 * B * N * itemsize
        rest_flat, fact_flat = pl.pallas_call(
            kernel,
            out_shape=(
                jax.ShapeDtypeStruct((B, N - split), x.dtype),
                jax.ShapeDtypeStruct((B, split), x.dtype),
            ),
            in_specs=[pl.BlockSpec(memory_space=pl.ANY)],
            out_specs=(
                pl.BlockSpec(memory_space=pl.ANY),
                pl.BlockSpec(memory_space=pl.ANY),
            ),
            scratch_shapes=[pltpu.SemaphoreType.DMA((2,))],
            cost_estimate=pl.CostEstimate(
                flops=0, transcendentals=0, bytes_accessed=bytes_accessed),
        )(x_flat)
        rest = rest_flat.reshape(B, C - k, H, W)
        return rest, log_det_jac, fact_flat

    z_len = z.shape[1]
    kernel = functools.partial(_factor_concat_kernel, split=split, z_len=z_len)
    bytes_accessed = 2 * B * (N + z_len) * itemsize
    rest_flat, z_new = pl.pallas_call(
        kernel,
        out_shape=(
            jax.ShapeDtypeStruct((B, N - split), x.dtype),
            jax.ShapeDtypeStruct((B, z_len + split), x.dtype),
        ),
        in_specs=[
            pl.BlockSpec(memory_space=pl.ANY),
            pl.BlockSpec(memory_space=pl.ANY),
        ],
        out_specs=(
            pl.BlockSpec(memory_space=pl.ANY),
            pl.BlockSpec(memory_space=pl.ANY),
        ),
        scratch_shapes=[pltpu.SemaphoreType.DMA((3,))],
        cost_estimate=pl.CostEstimate(
            flops=0, transcendentals=0, bytes_accessed=bytes_accessed),
    )(z, x_flat)

    rest = rest_flat.reshape(B, C - k, H, W)
    return rest, log_det_jac, z_new


# ---------------------------------------------------------------------------
# Reference + self-test
# ---------------------------------------------------------------------------

def _reference(x, log_det_jac, z=None):
    B, C, H, W = x.shape
    k = C // 2
    k += k % 2
    flat = x[:, :k].reshape(B, -1)
    if z is None:
        return x[:, k:], log_det_jac, flat
    return x[:, k:], log_det_jac, jnp.concatenate([z, flat], axis=1)


def _check(got, want):
    for g, w in zip(got, want):
        assert g.shape == w.shape, (g.shape, w.shape)
        assert g.dtype == w.dtype, (g.dtype, w.dtype)
        assert jnp.array_equal(g, w), "value mismatch"


if __name__ == "__main__":
    key = jax.random.PRNGKey(0)
    kx, kz1, kz2, kx2, kz3 = jax.random.split(key, 5)

    B, C, H, W = 2, 4, 16, 16
    x = jax.random.normal(kx, (B, C, H, W), dtype=jnp.float32)
    log_det_jac = jnp.zeros((B,), dtype=jnp.float32)
    z_small = jax.random.normal(kz1, (B, 8), dtype=jnp.float32)    # non-128-aligned width
    z_big = jax.random.normal(kz2, (B, 128), dtype=jnp.float32)    # 128-aligned width

    # Case 1: z is None.
    out1 = factor_out_forward(x, log_det_jac, None)
    jax.block_until_ready(out1)
    _check(out1, _reference(x, log_det_jac, None))

    # Case 2: z provided, width not 128-aligned (fused in-kernel concat anyway).
    out2 = factor_out_forward(x, log_det_jac, z_small)
    jax.block_until_ready(out2)
    _check(out2, _reference(x, log_det_jac, z_small))

    # Case 3: z provided, 128-aligned width.
    out3 = factor_out_forward(x, log_det_jac, z_big)
    jax.block_until_ready(out3)
    _check(out3, _reference(x, log_det_jac, z_big))

    # Case 4: bf16, small spatial dims (split not a multiple of 128), odd z width.
    xb = jax.random.normal(kx2, (3, 6, 4, 4), dtype=jnp.float32).astype(jnp.bfloat16)
    ldjb = jnp.zeros((3,), dtype=jnp.float32)
    zb = jax.random.normal(kz3, (3, 10), dtype=jnp.float32).astype(jnp.bfloat16)
    out4 = factor_out_forward(xb, ldjb, zb)
    jax.block_until_ready(out4)
    _check(out4, _reference(xb, ldjb, zb))

    # Case 5: C=3 -> k=2 (odd channel split), z is None.
    xc = jax.random.normal(kx2, (2, 3, 16, 16), dtype=jnp.float32)
    out5 = factor_out_forward(xc, log_det_jac, None)
    jax.block_until_ready(out5)
    _check(out5, _reference(xc, log_det_jac, None))

    print("KERNEL_OK")
</pallas_src>

<mosaic_0001>
module attributes {stable_mosaic.version = 11 : i64} {
  func.func @_factor_kernel(%arg0: memref<2x1024xf32, #tpu.memory_space<any>>, %arg1: memref<2x512xf32, #tpu.memory_space<any>>, %arg2: memref<2x512xf32, #tpu.memory_space<any>>, %arg3: memref<2x!tpu.dma_semaphore, #tpu.memory_space<semaphore_mem>>) attributes {dimension_semantics = [], scalar_prefetch = 0 : i64, scratch_operands = 1 : i64, tpu.core_type = #tpu.core_type<tc>} {
    %c0_i32 = arith.constant 0 : i32
    %c0_i32_0 = arith.constant 0 : i32
    %c512_i32 = arith.constant 512 : i32
    %0 = tpu.memref_slice %arg0[%c0_i32_0, %c512_i32] : memref<2x1024xf32, #tpu.memory_space<any>> -> memref<2x512xf32, #tpu.memory_space<any>>
    %1 = tpu.memref_slice %arg3[%c0_i32] : memref<2x!tpu.dma_semaphore, #tpu.memory_space<semaphore_mem>> -> memref<1x!tpu.dma_semaphore, #tpu.memory_space<semaphore_mem>>
    %2 = tpu.memref_squeeze %1 : memref<1x!tpu.dma_semaphore, #tpu.memory_space<semaphore_mem>> -> memref<!tpu.dma_semaphore, #tpu.memory_space<semaphore_mem>>
    tpu.enqueue_dma source(%0 : memref<2x512xf32, #tpu.memory_space<any>>) target(%arg1 : memref<2x512xf32, #tpu.memory_space<any>>) target_semaphore(%2 : memref<!tpu.dma_semaphore, #tpu.memory_space<semaphore_mem>>)
    %c1_i32 = arith.constant 1 : i32
    %c0_i32_1 = arith.constant 0 : i32
    %c0_i32_2 = arith.constant 0 : i32
    %3 = tpu.memref_slice %arg0[%c0_i32_1, %c0_i32_2] : memref<2x1024xf32, #tpu.memory_space<any>> -> memref<2x512xf32, #tpu.memory_space<any>>
    %4 = tpu.memref_slice %arg3[%c1_i32] : memref<2x!tpu.dma_semaphore, #tpu.memory_space<semaphore_mem>> -> memref<1x!tpu.dma_semaphore, #tpu.memory_space<semaphore_mem>>
    %5 = tpu.memref_squeeze %4 : memref<1x!tpu.dma_semaphore, #tpu.memory_space<semaphore_mem>> -> memref<!tpu.dma_semaphore, #tpu.memory_space<semaphore_mem>>
    tpu.enqueue_dma source(%3 : memref<2x512xf32, #tpu.memory_space<any>>) target(%arg2 : memref<2x512xf32, #tpu.memory_space<any>>) target_semaphore(%5 : memref<!tpu.dma_semaphore, #tpu.memory_space<semaphore_mem>>)
    %c0_i32_3 = arith.constant 0 : i32
    %c0_i32_4 = arith.constant 0 : i32
    %c512_i32_5 = arith.constant 512 : i32
    %6 = tpu.memref_slice %arg0[%c0_i32_4, %c512_i32_5] : memref<2x1024xf32, #tpu.memory_space<any>> -> memref<2x512xf32, #tpu.memory_space<any>>
    %7 = tpu.memref_slice %arg3[%c0_i32_3] : memref<2x!tpu.dma_semaphore, #tpu.memory_space<semaphore_mem>> -> memref<1x!tpu.dma_semaphore, #tpu.memory_space<semaphore_mem>>
    %8 = tpu.memref_squeeze %7 : memref<1x!tpu.dma_semaphore, #tpu.memory_space<semaphore_mem>> -> memref<!tpu.dma_semaphore, #tpu.memory_space<semaphore_mem>>
    tpu.wait_dma2 semaphore(%8 : memref<!tpu.dma_semaphore, #tpu.memory_space<semaphore_mem>>) src(%6 : memref<2x512xf32, #tpu.memory_space<any>>) dst(%arg1 : memref<2x512xf32, #tpu.memory_space<any>>)
    %c1_i32_6 = arith.constant 1 : i32
    %c0_i32_7 = arith.constant 0 : i32
    %c0_i32_8 = arith.constant 0 : i32
    %9 = tpu.memref_slice %arg0[%c0_i32_7, %c0_i32_8] : memref<2x1024xf32, #tpu.memory_space<any>> -> memref<2x512xf32, #tpu.memory_space<any>>
    %10 = tpu.memref_slice %arg3[%c1_i32_6] : memref<2x!tpu.dma_semaphore, #tpu.memory_space<semaphore_mem>> -> memref<1x!tpu.dma_semaphore, #tpu.memory_space<semaphore_mem>>
    %11 = tpu.memref_squeeze %10 : memref<1x!tpu.dma_semaphore, #tpu.memory_space<semaphore_mem>> -> memref<!tpu.dma_semaphore, #tpu.memory_space<semaphore_mem>>
    tpu.wait_dma2 semaphore(%11 : memref<!tpu.dma_semaphore, #tpu.memory_space<semaphore_mem>>) src(%9 : memref<2x512xf32, #tpu.memory_space<any>>) dst(%arg2 : memref<2x512xf32, #tpu.memory_space<any>>)
    return
  }
}

</mosaic_0001>

<bundles_post_ra>
// kernel: tpu_custom_call.1
= control target key start
LH: loop header
LB: loop body
LE: loop exit
PB: predicated region body
PF: predicated region fallthrough
CT: control target
= control target key end

     0   :  { %s66_s12 = smov [#allocation2]   ;;  %s67_s13 = smov [#allocation3]   ;;  %s98_s0 = inlined_call_operand.hbm [shape: f32[2,1024], index: 0, kind: input, shape index: {}]   ;;  %s99_s1 = inlined_call_operand.hbm [shape: f32[2,512], index: 1, kind: output, shape index: {0}]   ;;  %s100_s2 = inlined_call_operand.hbm [shape: f32[2,512], index: 2, kind: output, shape index: {1}]  }
   0x1   :  { %s8_s11 = scalar_lea.hbm %s98_s0, 128  ;;  %s68_s14 = smov 0  }
   0x2   :  { %21 = dma.general %s8_s11, 128, %s99_s1, %s66_s12, %s67_s13, [#allocation4], %s68_s14, 0  }
   0x3   :  { %s69_s17 = smov [#allocation2 + $0x1]   ;;  %s70_s18 = smov [#allocation5]  }
   0x4   :  { %35 = dma.general %s98_s0, 128, %s100_s2, %s69_s17, %s70_s18, [#allocation6], %s68_s14, 0  }
   0x5   :  { %62 = dma.done.wait [#allocation2], 128 }
   0x6   :  { %63 = vsyncadd [#allocation2], 4294967168 }
   0x7   :  { %64 = dma.done.wait [#allocation2 + $0x1], 128 }
   0x8   :  { %65 = vsyncadd [#allocation2 + $0x1], 4294967168 }
   0x9   :  { %42 = vsyncmov [#allocation2] }
   0xc   :  { %s43_s23 = vpop.sfrf %42 }
   0xd   :  { %p55_p0 = scmp.ne.s32.totalorder %s43_s23, 0 }
   0xf   :  { %47 = shalt.err (%p55_p0)  }
  0x10   :  { %49 = vsyncmov [#allocation2 + $0x1] }
  0x13   :  { %s50_s24 = vpop.sfrf %49 }
  0x14   :  { %p56_p1 = scmp.ne.s32.totalorder %s50_s24, 0 }
  0x16   :  { %54 = shalt.err (%p56_p1)  }

</bundles_post_ra>
